<compile_context>
chip_gen: v6e
topology: v6e:2x2x1
jax: 0.10.0
libtpu: 0.0.40
codegen_flags: <defaults>
</compile_context>

<pallas_src>
import jax
import jax.numpy as jnp
from jax.experimental import pallas as pl
from jax.experimental.pallas import tpu as pltpu

# ------------------------- config (args) ------------------------------------
VOCAB_REAL = 100          # real vocab size
VOCAB_PAD  = 128          # padded to full lane width for clean MXU contraction
N_SEG      = 2
SEQ_LEN    = 8
HIDDEN_SZ  = 32
N_CLASSES  = 8
IMG_C      = 4            # input image channels (PyTorch NCHW C)
IMG_HW     = 16           # spatial size
IMG_P      = IMG_HW * IMG_HW   # flattened spatial = 256 (lane-dense)
IMG_MID    = 8            # 1x1-conv output channels
ARGS_DF    = True         # args.df -> confidence-weighted fusion branch

# ---- packed parameter slab layout (row offsets, all 8-sublane aligned) ------
_R_TOK = 0                       # tok_emb   [VOCAB_PAD, H]
_R_SEG = _R_TOK + VOCAB_PAD      # seg_emb   [N_SEG, H]
_R_TW  = _R_SEG + 8              # txt_w     [H, n_classes]
_R_TB  = _R_TW + HIDDEN_SZ       # txt_b     [1, n_classes]
_R_IW1 = _R_TB + 8               # img_w1_t  [M, C]
_R_IB1 = _R_IW1 + 8              # img_b1    [M, 1]
_R_IW2 = _R_IB1 + 8              # img_w2    [M, n_classes]
_R_IB2 = _R_IW2 + 8              # img_b2    [1, n_classes]
_SLAB_ROWS = _R_IB2 + 8          # 208
_SLAB_COLS = HIDDEN_SZ           # 32

# ---- packed output slab layout (columns of a single (B, 32) output) ---------
_C_FUSED = 0
_C_TXT   = N_CLASSES
_C_IMG   = 2 * N_CLASSES
_C_TCONF = 3 * N_CLASSES
_C_ICONF = 3 * N_CLASSES + 1
OUT_COLS = 32                    # 26 used, padded to 32

_VMEM = pl.BlockSpec(memory_space=pltpu.MemorySpace.VMEM)


# ------------------------- fused Pallas kernel --------------------------------
def _make_fused_kernel(df: bool):
    def kernel(txtseg_ref, mask_ref, img_ref, prm_ref, out_ref):
        # ---- static views into the packed parameter slab (cheap VMEM loads) -
        tok_emb  = prm_ref[_R_TOK:_R_TOK + VOCAB_PAD, :]            # [128, H]
        seg_emb0 = prm_ref[_R_SEG:_R_SEG + 1, :]                    # [1, H]
        seg_emb1 = prm_ref[_R_SEG + 1:_R_SEG + 2, :]                # [1, H]
        txt_w    = prm_ref[_R_TW:_R_TW + HIDDEN_SZ, :N_CLASSES]     # [H, 8]
        txt_b    = prm_ref[_R_TB:_R_TB + 1, :N_CLASSES]             # [1, 8]
        img_w1t  = prm_ref[_R_IW1:_R_IW1 + IMG_MID, :IMG_C]         # [M, C]
        img_b1   = prm_ref[_R_IB1:_R_IB1 + IMG_MID, :1]             # [M, 1]
        img_w2   = prm_ref[_R_IW2:_R_IW2 + IMG_MID, :N_CLASSES]     # [M, 8]
        img_b2   = prm_ref[_R_IB2:_R_IB2 + 1, :N_CLASSES]           # [1, 8]

        # ---------------- text branch (BertClf stand-in) ---------------------
        tok  = txtseg_ref[:, 0:SEQ_LEN]                              # [B, S] i32
        seg  = txtseg_ref[:, SEQ_LEN:2 * SEQ_LEN]                    # [B, S] i32
        mask = mask_ref[...]                                         # [B, S] f32

        # In-kernel "gather": masked one-hot counts over the padded (128-lane)
        # vocab, then one unmasked K=128 MXU contraction.
        v_iota  = jax.lax.broadcasted_iota(jnp.int32, (1, 1, VOCAB_PAD), 2)
        tok_cnt = jnp.sum((tok[:, :, None] == v_iota).astype(jnp.float32)
                          * mask[:, :, None], axis=1)                # [B, 128]

        # Segment embedding (N_SEG=2, ids in {0,1}): pure VPU, no tiny matmul.
        denom = jnp.sum(mask, axis=1, keepdims=True)                 # [B, 1]
        cnt1  = jnp.sum(mask * seg.astype(jnp.float32), axis=1, keepdims=True)
        cnt0  = denom - cnt1

        pooled_sum = (jnp.dot(tok_cnt, tok_emb,
                              preferred_element_type=jnp.float32)
                      + cnt0 * seg_emb0 + cnt1 * seg_emb1)           # [B, H]
        pooled = pooled_sum / jnp.maximum(denom, 1.0)                # exact div
        txt_logits = (jnp.dot(pooled, txt_w,
                              preferred_element_type=jnp.float32)
                      + txt_b)                                       # [B, 8]

        # ---------------- image branch (ImageClf stand-in) -------------------
        # 1x1 conv with K=C=4, M=8: unrolled VPU multiply-accumulate over C.
        # Keeps P=256 lane-dense; no (B,M,C) weight broadcast, no MXU push/pop.
        img = img_ref[...]                                           # [B, C, P]
        acc = img_w1t[:, 0:1][None, :, :] * img[:, 0:1, :]           # [B, M, P]
        for c in range(1, IMG_C):
            acc = acc + img_w1t[:, c:c + 1][None, :, :] * img[:, c:c + 1, :]
        h = jnp.maximum(acc + img_b1[None, :, :], 0.0)               # bias+ReLU
        pooled_img = jnp.mean(h, axis=-1)                            # [B, M]
        img_logits = (jnp.dot(pooled_img, img_w2,
                              preferred_element_type=jnp.float32)
                      + img_b2)                                      # [B, 8]

        # ---------------- energy-based late fusion ---------------------------
        # Max-shifted logsumexp: identical to torch.log(torch.sum(torch.exp(x)))
        # but cannot overflow f32.
        t_max = jnp.max(txt_logits, axis=1, keepdims=True)
        i_max = jnp.max(img_logits, axis=1, keepdims=True)
        t_energy = t_max + jnp.log(jnp.sum(jnp.exp(txt_logits - t_max),
                                           axis=1, keepdims=True))
        i_energy = i_max + jnp.log(jnp.sum(jnp.exp(img_logits - i_max),
                                           axis=1, keepdims=True))
        tc = t_energy * 0.1                                          # energy/10
        ic = i_energy * 0.1

        if df:
            # .detach() is an identity in the forward pass.
            fused = txt_logits * tc + img_logits * ic
        else:
            fused = 0.5 * txt_logits + 0.5 * img_logits

        # ---- one lane-contiguous output slab, one write-back DMA ------------
        out_ref[...] = jnp.zeros_like(out_ref)
        out_ref[:, _C_FUSED:_C_FUSED + N_CLASSES] = fused
        out_ref[:, _C_TXT:_C_TXT + N_CLASSES]     = txt_logits
        out_ref[:, _C_IMG:_C_IMG + N_CLASSES]     = img_logits
        out_ref[:, _C_TCONF:_C_TCONF + 1]         = tc
        out_ref[:, _C_ICONF:_C_ICONF + 1]         = ic

    return kernel


# ------------------------- wrapper -------------------------------------------
def multimodal_late_fusion_clf(txt, mask, segment, img_nchw, params_slab,
                               df=ARGS_DF):
    B = txt.shape[0]
    # Pack txt + segment into one int32 array (1 DMA instead of 2).
    txtseg = jnp.concatenate(
        [txt.astype(jnp.int32), segment.astype(jnp.int32)], axis=1)   # [B, 2S]
    # Free reshape of the NCHW image -> (B, C, H*W); no XLA transpose op.
    img_bcp = img_nchw.reshape(B, IMG_C, IMG_P).astype(jnp.float32)

    # All operands are a few KB -> one ungridded call, everything in VMEM
    # (4 input DMAs + 1 output DMA).  For production batch sizes: grid over B
    # with dimension_semantics=("parallel",) so v7x's two TensorCores each
    # take half the batch; use 256-row batch tiles on v6e/v7x (128 on v5e) to
    # fill the MXU; consider bf16 weights (f32 accumulation kept via
    # preferred_element_type); and size tiles (with double-buffering counted)
    # against v7x's 32 MiB scoped / 64 MiB physical VMEM vs 128 MiB on
    # v5e/v6e, raising vmem_limit_bytes via pltpu.CompilerParams if needed.
    out = pl.pallas_call(
        _make_fused_kernel(df),
        out_shape=jax.ShapeDtypeStruct((B, OUT_COLS), jnp.float32),
        in_specs=[_VMEM, _VMEM, _VMEM, _VMEM],
        out_specs=_VMEM,
    )(txtseg, mask.astype(jnp.float32), img_bcp, params_slab)

    fused    = out[:, _C_FUSED:_C_FUSED + N_CLASSES]
    txt_out  = out[:, _C_TXT:_C_TXT + N_CLASSES]
    img_out  = out[:, _C_IMG:_C_IMG + N_CLASSES]
    txt_conf = out[:, _C_TCONF:_C_TCONF + 1]
    img_conf = out[:, _C_ICONF:_C_ICONF + 1]
    return fused, txt_out, img_out, txt_conf, img_conf


# ------------------------- parameter init & packing ---------------------------
def init_params(key):
    ks = jax.random.split(key, 8)
    s = 0.1
    return {
        "tok_emb":  s * jax.random.normal(ks[0], (VOCAB_REAL, HIDDEN_SZ), jnp.float32),
        "seg_emb":  s * jax.random.normal(ks[1], (N_SEG, HIDDEN_SZ), jnp.float32),
        "txt_w":    s * jax.random.normal(ks[2], (HIDDEN_SZ, N_CLASSES), jnp.float32),
        "txt_b":    s * jax.random.normal(ks[3], (1, N_CLASSES), jnp.float32),
        # conv weight stored pre-transposed (M, C) and bias as (M, 1) so the
        # kernel needs no transposes / reshapes.
        "img_w1_t": s * jax.random.normal(ks[4], (IMG_MID, IMG_C), jnp.float32),
        "img_b1":   s * jax.random.normal(ks[5], (IMG_MID, 1), jnp.float32),
        "img_w2":   s * jax.random.normal(ks[6], (IMG_MID, N_CLASSES), jnp.float32),
        "img_b2":   s * jax.random.normal(ks[7], (1, N_CLASSES), jnp.float32),
    }


def pack_params(p):
    """Pack all parameters into one (208, 32) f32 slab (one HBM->VMEM DMA).

    tok_emb is zero-padded from 100 to 128 rows (token ids are < 100, so the
    padded rows are never selected by the one-hot counts)."""
    slab = jnp.zeros((_SLAB_ROWS, _SLAB_COLS), jnp.float32)
    slab = slab.at[_R_TOK:_R_TOK + VOCAB_REAL, :].set(p["tok_emb"])
    slab = slab.at[_R_SEG:_R_SEG + N_SEG, :].set(p["seg_emb"])
    slab = slab.at[_R_TW:_R_TW + HIDDEN_SZ, :N_CLASSES].set(p["txt_w"])
    slab = slab.at[_R_TB, :N_CLASSES].set(p["txt_b"][0])
    slab = slab.at[_R_IW1:_R_IW1 + IMG_MID, :IMG_C].set(p["img_w1_t"])
    slab = slab.at[_R_IB1:_R_IB1 + IMG_MID, :1].set(p["img_b1"])
    slab = slab.at[_R_IW2:_R_IW2 + IMG_MID, :N_CLASSES].set(p["img_w2"])
    slab = slab.at[_R_IB2, :N_CLASSES].set(p["img_b2"][0])
    return slab


# ------------------------- main ----------------------------------------------
if __name__ == "__main__":
    key = jax.random.PRNGKey(0)
    kp, kt, ki = jax.random.split(key, 3)

    params = init_params(kp)
    params_slab = pack_params(params)

    B = 2
    txt     = jax.random.randint(kt, (B, SEQ_LEN), 0, VOCAB_REAL, dtype=jnp.int32)
    mask    = jnp.concatenate(
        [jnp.ones((B, SEQ_LEN - 2), jnp.float32), jnp.zeros((B, 2), jnp.float32)],
        axis=1)
    segment = jnp.zeros((B, SEQ_LEN), jnp.int32)
    img     = jax.random.normal(ki, (B, IMG_C, IMG_HW, IMG_HW), jnp.float32)  # NCHW

    outs = multimodal_late_fusion_clf(txt, mask, segment, img, params_slab)
    outs = jax.block_until_ready(outs)
    fused, txt_out, img_out, txt_conf, img_conf = outs

    assert fused.shape == (B, N_CLASSES)
    assert txt_out.shape == (B, N_CLASSES)
    assert img_out.shape == (B, N_CLASSES)
    assert txt_conf.shape == (B, 1)
    assert img_conf.shape == (B, 1)

    # ---- pure-JAX reference checks ----
    # text branch (gather + masked mean + linear)
    emb = params["tok_emb"][txt] + params["seg_emb"][segment]
    pooled = (emb * mask[:, :, None]).sum(1) / jnp.maximum(
        mask.sum(1, keepdims=True), 1.0)
    txt_ref = pooled @ params["txt_w"] + params["txt_b"]

    # image branch (1x1 conv + ReLU + global avg pool + linear)
    img_bcp = img.reshape(B, IMG_C, IMG_P)
    h_ref = jnp.einsum('mc,bcp->bmp', params["img_w1_t"], img_bcp) + params["img_b1"]
    h_ref = jnp.maximum(h_ref, 0.0)
    img_ref = h_ref.mean(-1) @ params["img_w2"] + params["img_b2"]

    # fusion math (unshifted logsumexp, exactly as in the PyTorch forward)
    tc_ref = (jnp.log(jnp.sum(jnp.exp(txt_ref), axis=1)) / 10.0)[:, None]
    ic_ref = (jnp.log(jnp.sum(jnp.exp(img_ref), axis=1)) / 10.0)[:, None]
    fused_ref = txt_ref * tc_ref + img_ref * ic_ref

    assert jnp.allclose(txt_out, txt_ref, atol=1e-4)
    assert jnp.allclose(img_out, img_ref, atol=1e-4)
    assert jnp.allclose(txt_conf, tc_ref, atol=1e-5)
    assert jnp.allclose(img_conf, ic_ref, atol=1e-5)
    assert jnp.allclose(fused, fused_ref, atol=1e-4)

    print("KERNEL_OK")
</pallas_src>

<mosaic_0001>
module attributes {stable_mosaic.version = 11 : i64} {
  func.func @kernel(%arg0: memref<2x16xi32, #tpu.memory_space<vmem>>, %arg1: memref<2x8xf32, #tpu.memory_space<vmem>>, %arg2: memref<2x4x256xf32, #tpu.memory_space<vmem>>, %arg3: memref<208x32xf32, #tpu.memory_space<vmem>>, %arg4: memref<2x32xf32, #tpu.memory_space<vmem>>) attributes {dimension_semantics = [], scalar_prefetch = 0 : i64, scratch_operands = 0 : i64, tpu.core_type = #tpu.core_type<tc>} {
    %c0 = arith.constant 0 : index
    %c0_0 = arith.constant 0 : index
    %0 = vector.load %arg3[%c0, %c0_0] : memref<208x32xf32, #tpu.memory_space<vmem>>, vector<128x32xf32>
    %c128 = arith.constant 128 : index
    %c0_1 = arith.constant 0 : index
    %1 = vector.load %arg3[%c128, %c0_1] : memref<208x32xf32, #tpu.memory_space<vmem>>, vector<1x32xf32>
    %c129 = arith.constant 129 : index
    %c0_2 = arith.constant 0 : index
    %2 = vector.load %arg3[%c129, %c0_2] : memref<208x32xf32, #tpu.memory_space<vmem>>, vector<1x32xf32>
    %c136 = arith.constant 136 : index
    %c0_3 = arith.constant 0 : index
    %3 = vector.load %arg3[%c136, %c0_3] : memref<208x32xf32, #tpu.memory_space<vmem>>, vector<32x8xf32>
    %c168 = arith.constant 168 : index
    %c0_4 = arith.constant 0 : index
    %4 = vector.load %arg3[%c168, %c0_4] : memref<208x32xf32, #tpu.memory_space<vmem>>, vector<1x8xf32>
    %c176 = arith.constant 176 : index
    %c0_5 = arith.constant 0 : index
    %5 = vector.load %arg3[%c176, %c0_5] : memref<208x32xf32, #tpu.memory_space<vmem>>, vector<8x4xf32>
    %c184 = arith.constant 184 : index
    %c0_6 = arith.constant 0 : index
    %6 = vector.load %arg3[%c184, %c0_6] : memref<208x32xf32, #tpu.memory_space<vmem>>, vector<8x1xf32>
    %c192 = arith.constant 192 : index
    %c0_7 = arith.constant 0 : index
    %7 = vector.load %arg3[%c192, %c0_7] : memref<208x32xf32, #tpu.memory_space<vmem>>, vector<8x8xf32>
    %c200 = arith.constant 200 : index
    %c0_8 = arith.constant 0 : index
    %8 = vector.load %arg3[%c200, %c0_8] : memref<208x32xf32, #tpu.memory_space<vmem>>, vector<1x8xf32>
    %c0_9 = arith.constant 0 : index
    %c0_10 = arith.constant 0 : index
    %9 = vector.load %arg0[%c0_9, %c0_10] : memref<2x16xi32, #tpu.memory_space<vmem>>, vector<2x8xi32>
    %c0_11 = arith.constant 0 : index
    %c8 = arith.constant 8 : index
    %10 = vector.load %arg0[%c0_11, %c8] : memref<2x16xi32, #tpu.memory_space<vmem>>, vector<2x8xi32>
    %c0_12 = arith.constant 0 : index
    %c0_13 = arith.constant 0 : index
    %11 = vector.load %arg1[%c0_12, %c0_13] : memref<2x8xf32, #tpu.memory_space<vmem>>, vector<2x8xf32>
    %12 = tpu.iota {dimensions = array<i32: 2>} : vector<1x1x128xi32>
    %13 = vector.shape_cast %9 : vector<2x8xi32> to vector<2x8x1xi32>
    %14 = vector.broadcast %13 : vector<2x8x1xi32> to vector<2x8x128xi32>
    %15 = vector.broadcast %12 : vector<1x1x128xi32> to vector<2x8x128xi32>
    %16 = arith.cmpi eq, %14, %15 : vector<2x8x128xi32>
    %17 = arith.extui %16 : vector<2x8x128xi1> to vector<2x8x128xi32>
    %18 = arith.sitofp %17 : vector<2x8x128xi32> to vector<2x8x128xf32>
    %19 = vector.shape_cast %11 : vector<2x8xf32> to vector<2x8x1xf32>
    %20 = vector.broadcast %19 : vector<2x8x1xf32> to vector<2x8x128xf32>
    %21 = arith.mulf %18, %20 : vector<2x8x128xf32>
    %cst = arith.constant dense<0.000000e+00> : vector<2x128xf32>
    %22 = vector.multi_reduction <add>, %21, %cst [1] : vector<2x8x128xf32> to vector<2x128xf32>
    %cst_14 = arith.constant dense<0.000000e+00> : vector<2xf32>
    %23 = vector.multi_reduction <add>, %11, %cst_14 [1] : vector<2x8xf32> to vector<2xf32>
    %24 = vector.shape_cast %23 : vector<2xf32> to vector<2x1xf32>
    %25 = arith.sitofp %10 : vector<2x8xi32> to vector<2x8xf32>
    %26 = arith.mulf %11, %25 : vector<2x8xf32>
    %cst_15 = arith.constant dense<0.000000e+00> : vector<2xf32>
    %27 = vector.multi_reduction <add>, %26, %cst_15 [1] : vector<2x8xf32> to vector<2xf32>
    %28 = vector.shape_cast %27 : vector<2xf32> to vector<2x1xf32>
    %29 = arith.subf %24, %28 : vector<2x1xf32>
    %cst_16 = arith.constant dense<0.000000e+00> : vector<2x32xf32>
    %30 = tpu.matmul %22, %0, %cst_16 {dimension_numbers = #tpu.dot_dimension_numbers<[1], [0], [0], [1], [0, 0, 1, 1], [], []>} : vector<2x128xf32>, vector<128x32xf32>, vector<2x32xf32> -> vector<2x32xf32>
    %31 = vector.broadcast %29 : vector<2x1xf32> to vector<2x32xf32>
    %32 = vector.broadcast %1 : vector<1x32xf32> to vector<2x32xf32>
    %33 = arith.mulf %31, %32 : vector<2x32xf32>
    %34 = arith.addf %30, %33 : vector<2x32xf32>
    %35 = vector.broadcast %28 : vector<2x1xf32> to vector<2x32xf32>
    %36 = vector.broadcast %2 : vector<1x32xf32> to vector<2x32xf32>
    %37 = arith.mulf %35, %36 : vector<2x32xf32>
    %38 = arith.addf %34, %37 : vector<2x32xf32>
    %cst_17 = arith.constant 1.000000e+00 : f32
    %39 = vector.broadcast %cst_17 : f32 to vector<2x1xf32>
    %40 = arith.maximumf %24, %39 : vector<2x1xf32>
    %41 = vector.broadcast %40 : vector<2x1xf32> to vector<2x32xf32>
    %42 = arith.divf %38, %41 : vector<2x32xf32>
    %cst_18 = arith.constant dense<0.000000e+00> : vector<2x8xf32>
    %43 = tpu.matmul %42, %3, %cst_18 {dimension_numbers = #tpu.dot_dimension_numbers<[1], [0], [0], [1], [0, 0, 1, 1], [], []>} : vector<2x32xf32>, vector<32x8xf32>, vector<2x8xf32> -> vector<2x8xf32>
    %44 = vector.broadcast %4 : vector<1x8xf32> to vector<2x8xf32>
    %45 = arith.addf %43, %44 : vector<2x8xf32>
    %c0_19 = arith.constant 0 : index
    %c0_20 = arith.constant 0 : index
    %c0_21 = arith.constant 0 : index
    %46 = vector.load %arg2[%c0_19, %c0_20, %c0_21] : memref<2x4x256xf32, #tpu.memory_space<vmem>>, vector<2x4x256xf32>
    %47 = vector.extract_strided_slice %5 {offsets = [0, 0], sizes = [8, 1], strides = [1, 1]} : vector<8x4xf32> to vector<8x1xf32>
    %48 = vector.shape_cast %47 : vector<8x1xf32> to vector<1x8x1xf32>
    %49 = vector.extract_strided_slice %46 {offsets = [0, 0, 0], sizes = [2, 1, 256], strides = [1, 1, 1]} : vector<2x4x256xf32> to vector<2x1x256xf32>
    %50 = vector.broadcast %48 : vector<1x8x1xf32> to vector<2x8x256xf32>
    %51 = vector.broadcast %49 : vector<2x1x256xf32> to vector<2x8x256xf32>
    %52 = arith.mulf %50, %51 : vector<2x8x256xf32>
    %53 = vector.extract_strided_slice %5 {offsets = [0, 1], sizes = [8, 1], strides = [1, 1]} : vector<8x4xf32> to vector<8x1xf32>
    %54 = vector.shape_cast %53 : vector<8x1xf32> to vector<1x8x1xf32>
    %55 = vector.extract_strided_slice %46 {offsets = [0, 1, 0], sizes = [2, 1, 256], strides = [1, 1, 1]} : vector<2x4x256xf32> to vector<2x1x256xf32>
    %56 = vector.broadcast %54 : vector<1x8x1xf32> to vector<2x8x256xf32>
    %57 = vector.broadcast %55 : vector<2x1x256xf32> to vector<2x8x256xf32>
    %58 = arith.mulf %56, %57 : vector<2x8x256xf32>
    %59 = arith.addf %52, %58 : vector<2x8x256xf32>
    %60 = vector.extract_strided_slice %5 {offsets = [0, 2], sizes = [8, 1], strides = [1, 1]} : vector<8x4xf32> to vector<8x1xf32>
    %61 = vector.shape_cast %60 : vector<8x1xf32> to vector<1x8x1xf32>
    %62 = vector.extract_strided_slice %46 {offsets = [0, 2, 0], sizes = [2, 1, 256], strides = [1, 1, 1]} : vector<2x4x256xf32> to vector<2x1x256xf32>
    %63 = vector.broadcast %61 : vector<1x8x1xf32> to vector<2x8x256xf32>
    %64 = vector.broadcast %62 : vector<2x1x256xf32> to vector<2x8x256xf32>
    %65 = arith.mulf %63, %64 : vector<2x8x256xf32>
    %66 = arith.addf %59, %65 : vector<2x8x256xf32>
    %67 = vector.extract_strided_slice %5 {offsets = [0, 3], sizes = [8, 1], strides = [1, 1]} : vector<8x4xf32> to vector<8x1xf32>
    %68 = vector.shape_cast %67 : vector<8x1xf32> to vector<1x8x1xf32>
    %69 = vector.extract_strided_slice %46 {offsets = [0, 3, 0], sizes = [2, 1, 256], strides = [1, 1, 1]} : vector<2x4x256xf32> to vector<2x1x256xf32>
    %70 = vector.broadcast %68 : vector<1x8x1xf32> to vector<2x8x256xf32>
    %71 = vector.broadcast %69 : vector<2x1x256xf32> to vector<2x8x256xf32>
    %72 = arith.mulf %70, %71 : vector<2x8x256xf32>
    %73 = arith.addf %66, %72 : vector<2x8x256xf32>
    %74 = vector.shape_cast %6 : vector<8x1xf32> to vector<1x8x1xf32>
    %75 = vector.broadcast %74 : vector<1x8x1xf32> to vector<2x8x256xf32>
    %76 = arith.addf %73, %75 : vector<2x8x256xf32>
    %cst_22 = arith.constant 0.000000e+00 : f32
    %77 = vector.broadcast %cst_22 : f32 to vector<2x8x256xf32>
    %78 = arith.maximumf %76, %77 : vector<2x8x256xf32>
    %cst_23 = arith.constant dense<0.000000e+00> : vector<2x8xf32>
    %79 = vector.multi_reduction <add>, %78, %cst_23 [2] : vector<2x8x256xf32> to vector<2x8xf32>
    %cst_24 = arith.constant 2.560000e+02 : f32
    %80 = vector.broadcast %cst_24 : f32 to vector<2x8xf32>
    %81 = arith.divf %79, %80 : vector<2x8xf32>
    %cst_25 = arith.constant dense<0.000000e+00> : vector<2x8xf32>
    %82 = tpu.matmul %81, %7, %cst_25 {dimension_numbers = #tpu.dot_dimension_numbers<[1], [0], [0], [1], [0, 0, 1, 1], [], []>} : vector<2x8xf32>, vector<8x8xf32>, vector<2x8xf32> -> vector<2x8xf32>
    %83 = vector.broadcast %8 : vector<1x8xf32> to vector<2x8xf32>
    %84 = arith.addf %82, %83 : vector<2x8xf32>
    %cst_26 = arith.constant dense<0xFF800000> : vector<2xf32>
    %85 = vector.multi_reduction <maximumf>, %45, %cst_26 [1] : vector<2x8xf32> to vector<2xf32>
    %86 = vector.shape_cast %85 : vector<2xf32> to vector<2x1xf32>
    %cst_27 = arith.constant dense<0xFF800000> : vector<2xf32>
    %87 = vector.multi_reduction <maximumf>, %84, %cst_27 [1] : vector<2x8xf32> to vector<2xf32>
    %88 = vector.shape_cast %87 : vector<2xf32> to vector<2x1xf32>
    %89 = vector.broadcast %86 : vector<2x1xf32> to vector<2x8xf32>
    %90 = arith.subf %45, %89 : vector<2x8xf32>
    %91 = math.exp %90 : vector<2x8xf32>
    %cst_28 = arith.constant dense<0.000000e+00> : vector<2xf32>
    %92 = vector.multi_reduction <add>, %91, %cst_28 [1] : vector<2x8xf32> to vector<2xf32>
    %93 = vector.shape_cast %92 : vector<2xf32> to vector<2x1xf32>
    %94 = math.log %93 : vector<2x1xf32>
    %95 = arith.addf %86, %94 : vector<2x1xf32>
    %96 = vector.broadcast %88 : vector<2x1xf32> to vector<2x8xf32>
    %97 = arith.subf %84, %96 : vector<2x8xf32>
    %98 = math.exp %97 : vector<2x8xf32>
    %cst_29 = arith.constant dense<0.000000e+00> : vector<2xf32>
    %99 = vector.multi_reduction <add>, %98, %cst_29 [1] : vector<2x8xf32> to vector<2xf32>
    %100 = vector.shape_cast %99 : vector<2xf32> to vector<2x1xf32>
    %101 = math.log %100 : vector<2x1xf32>
    %102 = arith.addf %88, %101 : vector<2x1xf32>
    %cst_30 = arith.constant 1.000000e-01 : f32
    %103 = vector.broadcast %cst_30 : f32 to vector<2x1xf32>
    %104 = arith.mulf %95, %103 : vector<2x1xf32>
    %cst_31 = arith.constant 1.000000e-01 : f32
    %105 = vector.broadcast %cst_31 : f32 to vector<2x1xf32>
    %106 = arith.mulf %102, %105 : vector<2x1xf32>
    %107 = vector.broadcast %104 : vector<2x1xf32> to vector<2x8xf32>
    %108 = arith.mulf %45, %107 : vector<2x8xf32>
    %109 = vector.broadcast %106 : vector<2x1xf32> to vector<2x8xf32>
    %110 = arith.mulf %84, %109 : vector<2x8xf32>
    %111 = arith.addf %108, %110 : vector<2x8xf32>
    %cst_32 = arith.constant 0.000000e+00 : f32
    %112 = vector.broadcast %cst_32 : f32 to vector<2x32xf32>
    %c0_33 = arith.constant 0 : index
    %c0_34 = arith.constant 0 : index
    %113 = vector.load %arg4[%c0_33, %c0_34] : memref<2x32xf32, #tpu.memory_space<vmem>>, vector<2x32xf32>
    tpu.vector_store %arg4[%c0_33, %c0_34], %112 {strides = array<i32>} : memref<2x32xf32, #tpu.memory_space<vmem>>, vector<2x32xf32>,
    %c0_35 = arith.constant 0 : index
    %c0_36 = arith.constant 0 : index
    %114 = vector.load %arg4[%c0_35, %c0_36] : memref<2x32xf32, #tpu.memory_space<vmem>>, vector<2x8xf32>
    tpu.vector_store %arg4[%c0_35, %c0_36], %111 {strides = array<i32>} : memref<2x32xf32, #tpu.memory_space<vmem>>, vector<2x8xf32>,
    %c0_37 = arith.constant 0 : index
    %c8_38 = arith.constant 8 : index
    %115 = vector.load %arg4[%c0_37, %c8_38] : memref<2x32xf32, #tpu.memory_space<vmem>>, vector<2x8xf32>
    tpu.vector_store %arg4[%c0_37, %c8_38], %45 {strides = array<i32>} : memref<2x32xf32, #tpu.memory_space<vmem>>, vector<2x8xf32>,
    %c0_39 = arith.constant 0 : index
    %c16 = arith.constant 16 : index
    %116 = vector.load %arg4[%c0_39, %c16] : memref<2x32xf32, #tpu.memory_space<vmem>>, vector<2x8xf32>
    tpu.vector_store %arg4[%c0_39, %c16], %84 {strides = array<i32>} : memref<2x32xf32, #tpu.memory_space<vmem>>, vector<2x8xf32>,
    %c0_40 = arith.constant 0 : index
    %c24 = arith.constant 24 : index
    %117 = vector.load %arg4[%c0_40, %c24] : memref<2x32xf32, #tpu.memory_space<vmem>>, vector<2x1xf32>
    tpu.vector_store %arg4[%c0_40, %c24], %104 {strides = array<i32>} : memref<2x32xf32, #tpu.memory_space<vmem>>, vector<2x1xf32>,
    %c0_41 = arith.constant 0 : index
    %c25 = arith.constant 25 : index
    %118 = vector.load %arg4[%c0_41, %c25] : memref<2x32xf32, #tpu.memory_space<vmem>>, vector<2x1xf32>
    tpu.vector_store %arg4[%c0_41, %c25], %106 {strides = array<i32>} : memref<2x32xf32, #tpu.memory_space<vmem>>, vector<2x1xf32>,
    return
  }
}

</mosaic_0001>

<bundles_post_ra>
// kernel: tpu_custom_call.1
= control target key start
LH: loop header
LB: loop body
LE: loop exit
PB: predicated region body
PF: predicated region fallthrough
CT: control target
= control target key end

     0   :  { %v47_v0 = vlaneseq  ;;  %v774_v1 = vmov 1   ;;  %v775_v4 = vmov 0   ;;  %v776_v7 = vmov 0.0   ;;  %s1007_s0 = inlined_call_operand.vmem [shape: s32[2,16], index: 0, kind: input, shape index: {}]   ;;  %s1008_s1 = inlined_call_operand.vmem [shape: f32[2,8], index: 1, kind: input, shape index: {}]   ;;  %s1009_s2 = inlined_call_operand.vmem [shape: f32[2,4,256], index: 2, kind: input, shape index: {}]   ;;  %s1010_s3 = inlined_call_operand.vmem [shape: f32[208,32], index: 3, kind: input, shape index: {}]   ;;  %s1011_s4 = inlined_call_operand.hbm [shape: f32[2,32], index: 4, kind: output, shape index: {}]  }
   0x1   :  { %737 = vset.pattern.permute.xlu1 %v774_v1  ;;  %v33_v2 = vld [vmem:[%s1010_s3 + $0x78] sm:$0xff]  ;;  %736 = vset.pattern.permute.xlu0 %v775_v4  ;;  %v45_v5 = vld [vmem:[%s1007_s0] sm:$0x3]  ;;  %v32_v8 = vld [vmem:[%s1010_s3 + $0x70] sm:$0xff] }
   0x2   :  { %v813_v3 = vshrl.u32 %v47_v0, 7  ;;  %v822_v6 = vld [vmem:[%s1008_s1] sm:$0x3]  ;;  %675 = vmatprep.subr.mxu0 %v776_v7  ;;  %710 = vmatprep.subr.mxu1 %v776_v7 }
   0x3   :  { %676 = vmatpush3.msra.mxu0 %v33_v2 }
   0x4   :  { %v830_v9 = vsub.s32 0, %v813_v3  ;;  %v833_v10 = vsub.s32 1, %v813_v3  ;;  %677 = vmatprep.subr.mxu0 %v776_v7 }
   0x5   :  { %9 = vsyncpa [#allocation3], 0  ;;  %678 = vmatpush3.msra.mxu0 %v32_v8  ;;  %v31_v13 = vld [vmem:[%s1010_s3 + $0x68] sm:$0xff]  ;;  %v30_v16 = vld [vmem:[%s1010_s3 + $0x60] sm:$0xff]  ;;  %vm777_vm0 = vmmov 0   ;;  %v778_v21 = vmov 2   ;;  %v101_v24 = vcvt.s32.f32 %v45_v5 }
   0x6   :  { %v52_v11 = vrot.slane %v45_v5, %v830_v9  ;;  %v72_v12 = vrot.slane %v822_v6, %v830_v9  ;;  %679 = vmatprep.subr.mxu0 %v776_v7  ;;  %v59_v14 = vrot.slane %v45_v5, %v833_v10  ;;  %v79_v15 = vrot.slane %v822_v6, %v833_v10  ;;  %v29_v17 = vld [vmem:[%s1010_s3 + $0x58] sm:$0xff]  ;;  %v41_v18 = vld [vmem:[%s1010_s3 + $0xb0] sm:$0xff]  ;;  %v27_v20 = vld [vmem:[%s1010_s3 + $0x48] sm:$0xff]  ;;  %s780_s13 = smov 120   ;;  %s782_s21 = smov 16  }
   0x7   :  { %680 = vmatpush3.msra.mxu0 %v31_v13  ;;  %707 = vmatprep.mubr.msk.f32.mxu0 %vm777_vm0, %v776_v7  ;;  %v28_v19 = vld [vmem:[%s1010_s3 + $0x50] sm:$0xff]  ;;  %v779_v22 = vmov 3   ;;  %v26_v23 = vld [vmem:[%s1010_s3 + $0x40] sm:$0xff]  ;;  %v25_v25 = vld [vmem:[%s1010_s3 + $0x38] sm:$0xff]  ;;  %vm97_vm1 = vcmask 58368   ;;  %v913_v35 = vand.u32 127, %v47_v0 }
   0x8   :  { %54 = vbcast.lane.b32.xlu0 %v52_v11, 256  ;;  %74 = vbcast.lane.b32.xlu1 %v72_v12, 256  ;;  %v24_v26 = vld [vmem:[%s1010_s3 + $0x30] sm:$0xff]  ;;  %v42_v27 = vld [vmem:[%s1010_s3 + $0xb8] sm:$0xff]  ;;  %v23_v28 = vld [vmem:[%s1010_s3 + $0x28] sm:$0xff]  ;;  %v98_v34 = vsel %vm97_vm1, %v822_v6, 0.0 }
   0x9   :  { %681 = vmatprep.subr.mxu0 %v776_v7  ;;  %718 = vmatprep.mubr.msk.f32.mxu1 %vm777_vm0, %v776_v7  ;;  %v22_v29 = vld [vmem:[%s1010_s3 + $0x20] sm:$0xff]  ;;  %v21_v30 = vld [vmem:[%s1010_s3 + $0x18] sm:$0xff]  ;;  %v20_v31 = vld [vmem:[%s1010_s3 + $0x10] sm:$0xff]  ;;  %v337_v43 = vsub.s32 5, %v813_v3  ;;  %v928_v48 = vsub.s32 2, %v813_v3  ;;  %v385_v49 = vsub.s32 6, %v813_v3 }
   0xa   :  { %682 = vmatpush3.msra.mxu0 %v30_v16  ;;  %v19_v32 = vld [vmem:[%s1010_s3 + $0x8] sm:$0xff]  ;;  %v18_v33 = vld [vmem:[%s1010_s3] sm:$0xff]  ;;  %v293_v52 = vsub.s32 4, %v813_v3  ;;  %v935_v59 = vsub.s32 3, %v813_v3  ;;  %vm118_vm4 = vcmask 1041409   ;;  %v433_v12 = vsub.s32 7, %v813_v3 }
   0xb   :  { %683 = vmatprep.subr.mxu0 %v776_v7  ;;  %v278_v40 = vld [vmem:[%s1009_s2] sm:$0xff]  ;;  %v279_v45 = vld [vmem:[%s1009_s2 + $0x8] sm:$0xff]  ;;  %vm204_vm5 = vcmask 261120   ;;  %vm508_vm6 = vcmask 64512   ;;  %vm610_vm7 = vcmask 254976   ;;  %vm617_vm8 = vcmask 123968  }
   0xc   :  { %61 = vbcast.lane.b32.xlu0 %v59_v14, 256  ;;  %81 = vbcast.lane.b32.xlu1 %v79_v15, 256  ;;  %v334_v47 = vrot.slane %v278_v40, %v833_v10  ;;  %v338_v53 = vrot.slane %v278_v40, %v337_v43  ;;  %v342_v54 = vrot.slane %v279_v45, %v833_v10  ;;  %vm623_vm9 = vcmask 189568   ;;  %s783_s22 = smov [#allocation2]  }
   0xd   :  { %684 = vmatpush3.msra.mxu0 %v29_v17  ;;  %v290_v55 = vrot.slane %v278_v40, %v830_v9  ;;  %v346_v58 = vrot.slane %v279_v45, %v337_v43  ;;  %v382_v61 = vrot.slane %v278_v40, %v928_v48  ;;  %v386_v62 = vrot.slane %v278_v40, %v385_v49  ;;  %s635_s0 = sshll.u32 %s783_s22, 4  ;;  %s636_s0 = int_to_ptr.vmem [resolvable:$true] %s635_s0 }
   0xe   :  { %685 = vmatprep.subr.mxu0 %v776_v7  ;;  %v354_v60 = vrot.slane %v334_v47, %v833_v10  ;;  %v390_v63 = vrot.slane %v279_v45, %v928_v48  ;;  %v294_v2 = vrot.slane %v278_v40, %v293_v52  ;;  %v362_v5 = vrot.slane %v342_v54, %v833_v10  ;;  %s752_s1 = scalar_lea.vmem %s636_s0, 32  ;;  %p757_p1 = scmp.lt.s32.totalorder %s636_s0, %s636_s0 }
   0xf   :  { %686 = vmatpush3.msra.mxu0 %v28_v19  ;;  %v394_v8 = vrot.slane %v279_v45, %v385_v49  ;;  %v302_v11 = vrot.slane %v279_v45, %v293_v52  ;;  %v358_v15 = vrot.slane %v338_v53, %v833_v10  ;;  %v430_v16 = vrot.slane %v278_v40, %v935_v59  ;;  %p753_p0 = scmp.ne.s32.totalorder %s636_s0, %s752_s1  ;;  %p758_p2 = scmp.lt.s32.totalorder %s752_s1, %s752_s1 }
  0x10   :  { %328 = vperm.xlu1 %737, %v41_v18   ;;  %282 = vperm.xlu0 %736, %v41_v18   ;;  %v366_v17 = vrot.slane %v346_v58, %v833_v10  ;;  %v406_v19 = vrot.slane %v386_v62, %v928_v48  ;;  %611 = vst.msk [vmem:[#allocation2] sm:$0x3] %vm610_vm7, %v776_v7  ;;  %vm625_vm10 = vcmask 197824   ;;  %vm627_vm11 = vcmask 206024  }
  0x11   :  { %687 = vmatprep.subr.mxu0 %v776_v7  ;;  %p759_p3 = por %p758_p2, %p757_p1 }
  0x12   :  { %688 = vmatpush3.msra.mxu0 %v27_v20  ;;  %v410_v20 = vrot.slane %v390_v63, %v928_v48 }
  0x13   :  { %689 = vmatprep.subr.mxu0 %v776_v7  ;;  %p760_p4 = pnand %p759_p3, %p753_p0 }
  0x14   :  { %738 = vset.pattern.permute.xlu1 %v778_v21  ;;  %739 = vset.pattern.permute.xlu0 %v779_v22  ;;  %v310_v22 = vrot.slane %v290_v55, %v830_v9 }
  0x15   :  { %376 = vperm.xlu1 %738, %v41_v18   ;;  %424 = vperm.xlu0 %739, %v41_v18   ;;  %v402_v18 = vrot.slane %v382_v61, %v928_v48 }
  0x16   :  { %690 = vmatpush3.msra.mxu0 %v26_v23  ;;  %v314_v23 = vrot.slane %v294_v2, %v830_v9 }
  0x17   :  { %691 = vmatprep.subr.mxu0 %v776_v7 }
  0x18   :  { %692 = vmatpush3.msra.mxu0 %v25_v25  ;;  %v322_v25 = vrot.slane %v302_v11, %v830_v9 }
  0x19   :  { %103 = vrot.lane.b32.xlu1 %v101_v24, %s780_s13  ;;  %693 = vmatprep.subr.mxu0 %v776_v7 }
  0x1a   :  { %740 = vset.pattern.permute.xlu1 %v775_v4  ;;  %694 = vmatpush3.msra.mxu0 %v24_v26  ;;  %v434_v26 = vrot.slane %v278_v40, %v433_v12 }
  0x1b   :  { %741 = vset.pattern.permute.xlu0 %v775_v4  ;;  %695 = vmatprep.subr.mxu0 %v776_v7  ;;  %v298_v4 = vrot.slane %v279_v45, %v830_v9 }
  0x1c   :  { %696 = vmatpush3.msra.mxu0 %v23_v28  ;;  %v442_v28 = vrot.slane %v279_v45, %v433_v12  ;;  %v454_v43 = vrot.slane %v434_v26, %v935_v59  ;;  %v36_v26 = vld [vmem:[%s1010_s3 + $0x88] sm:$0xff] }
  0x1d   :  { %473 = vperm.xlu1 %740, %v42_v27   ;;  %697 = vmatprep.subr.mxu0 %v776_v7  ;;  %v318_v24 = vrot.slane %v298_v4, %v830_v9  ;;  %v438_v27 = vrot.slane %v279_v45, %v935_v59 }
  0x1e   :  { %698 = vmatpush3.msra.mxu0 %v22_v29  ;;  %v462_v45 = vrot.slane %v442_v28, %v935_v59 }
  0x1f   :  { %699 = vmatprep.subr.mxu0 %v776_v7 }
  0x20   :  { %700 = vmatpush3.msra.mxu0 %v21_v30 }
  0x21   :  { %701 = vmatprep.subr.mxu0 %v776_v7 }
  0x22   :  { %702 = vmatpush3.msra.mxu0 %v20_v31  ;;  %v414_v31 = vrot.slane %v394_v8, %v928_v48 }
  0x23   :  { %703 = vmatprep.subr.mxu0 %v776_v7 }
  0x24   :  { %704 = vmatpush3.msra.mxu0 %v19_v32 }
  0x25   :  { %705 = vmatprep.subr.mxu0 %v776_v7 }
  0x26   :  { %706 = vmatpush3.msra.mxu0 %v18_v33  ;;  %v450_v33 = vrot.slane %v430_v16, %v935_v59 }
  0x34   :  { %99 = vadd.xlane.f32.xlu0 %v98_v34 }
  0x7a   :  { %v55_v36 = vpop.permute.xlu0 %54  ;;  %v75_v37 = vpop.permute.xlu1 %74 }
  0x7b   :  { %vm63_vm2 = vcmp.eq.s32.totalorder %v55_v36, %v913_v35 }
  0x7c   :  { %v643_v38 = vsel %vm63_vm2, 1.0, %v776_v7 }
  0x7d   :  { %v83_v39 = vmul.f32 %v643_v38, %v75_v37 }
  0x7e   :  { %v62_v41 = vpop.permute.xlu0 %61  ;;  %v82_v42 = vpop.permute.xlu1 %81 }
  0x7f   :  { %v85_v44 = vrot.slane %v83_v39, 4  ;;  %vm64_vm3 = vcmp.eq.s32.totalorder %v62_v41, %v913_v35 }
  0x80   :  { %v644_v46 = vsel %vm64_vm3, 1.0, %v776_v7 }
  0x81   :  { %v86_v50 = vadd.f32 %v85_v44, %v83_v39  ;;  %v84_v51 = vmul.f32 %v644_v46, %v82_v42  ;;  %v458_v44 = vrot.slane %v438_v27, %v935_v59 }
  0x83   :  { %v87_v56 = vrot.slane %v86_v50, 2  ;;  %v91_v57 = vrot.slane %v84_v51, 4 }
  0x85   :  { %v88_v0 = vadd.f32 %v87_v56, %v86_v50  ;;  %v92_v1 = vadd.f32 %v91_v57, %v84_v51 }
  0x87   :  { %v89_v13 = vrot.slane %v88_v0, 1  ;;  %v93_v14 = vrot.slane %v92_v1, 2 }
  0x89   :  { %v94_v21 = vadd.f32 %v93_v14, %v92_v1  ;;  %v90_v29 = vadd.f32 %v89_v13, %v88_v0 }
  0x8b   :  { %v95_v10 = vrot.slane %v94_v21, 1  ;;  %v329_v30 = vpop.permute.xlu1 %328  ;;  %v283_v32 = vpop.permute.xlu0 %282 }
  0x8c   :  { %v367_v34 = vmul.f32 %v354_v60, %v329_v30  ;;  %v368_v36 = vmul.f32 %v358_v15, %v329_v30  ;;  %v369_v37 = vmul.f32 %v362_v5, %v329_v30  ;;  %v370_v38 = vmul.f32 %v366_v17, %v329_v30 }
  0x8d   :  { %v96_v39 = vadd.f32 %v95_v10, %v94_v21  ;;  %v323_v41 = vmul.f32 %v310_v22, %v283_v32  ;;  %v324_v42 = vmul.f32 %v314_v23, %v283_v32  ;;  %v325_v9 = vmul.f32 %v318_v24, %v283_v32  ;;  %v38_v24 = vld [vmem:[%s1010_s3 + $0x98] sm:$0xff] }
  0x8e   :  { %v326_v40 = vmul.f32 %v322_v25, %v283_v32  ;;  %v37_v25 = vld [vmem:[%s1010_s3 + $0x90] sm:$0xff]  ;;  %v646_v32 = vld [vmem:[%s1010_s3 + $0x81] ss:$0 sm:$0xff] }
  0x8f   :  { %v119_v46 = vsel %vm118_vm4, %v96_v39, %v90_v29  ;;  %v371_v47 = vadd.f32 %v367_v34, %v323_v41  ;;  %v372_v48 = vadd.f32 %v368_v36, %v324_v42  ;;  %v373_v49 = vadd.f32 %v369_v37, %v325_v9 }
  0x90   :  { %708 = vmatmul.mubr.f32.vlgmr.msra.gmra.mxu0 %v119_v46  ;;  %v377_v50 = vpop.permute.xlu1 %376  ;;  %v374_v51 = vadd.f32 %v370_v38, %v326_v40  ;;  %v425_v52 = vpop.permute.xlu0 %424  ;;  %v501_v41 = vsub.s32 %v913_v35, %v813_v3  ;;  %v647_v35 = vld [vmem:[%s1010_s3 + $0xa8] ss:$0 sm:$0xff] }
  0x91   :  { %v415_v53 = vmul.f32 %v402_v18, %v377_v50  ;;  %v416_v54 = vmul.f32 %v406_v19, %v377_v50  ;;  %v417_v55 = vmul.f32 %v410_v20, %v377_v50  ;;  %v418_v56 = vmul.f32 %v414_v31, %v377_v50  ;;  %v645_v31 = vld [vmem:[%s1010_s3 + $0x80] ss:$0 sm:$0xff] }
  0x92   :  { %v463_v57 = vmul.f32 %v450_v33, %v425_v52  ;;  %v464_v58 = vmul.f32 %v454_v43, %v425_v52  ;;  %v465_v60 = vmul.f32 %v458_v44, %v425_v52  ;;  %v466_v61 = vmul.f32 %v462_v45, %v425_v52  ;;  %v43_v45 = vld [vmem:[%s1010_s3 + $0xc0] sm:$0xff] }
  0x93   :  { %v419_v62 = vadd.f32 %v415_v53, %v371_v47  ;;  %v420_v63 = vadd.f32 %v416_v54, %v372_v48  ;;  %v421_v59 = vadd.f32 %v417_v55, %v373_v49  ;;  %v422_v0 = vadd.f32 %v418_v56, %v374_v51  ;;  %v649_v51 = vld [vmem:[%s1010_s3 + $0xc8] ss:$0 sm:$0xff] }
  0x94   :  { %v104_v1 = vpop.permute.xlu1 %103 }
  0x95   :  { %v106_v2 = vmul.f32 %v104_v1, %v822_v6  ;;  %v467_v4 = vadd.f32 %v463_v57, %v419_v62  ;;  %v468_v5 = vadd.f32 %v464_v58, %v420_v63  ;;  %v469_v8 = vadd.f32 %v465_v60, %v421_v59  ;;  %v39_v6 = vld [vmem:[%s1010_s3 + $0xa0] sm:$0xff]  ;;  %s781_s3 = smov 8  }
  0x96   :  { %v470_v11 = vadd.f32 %v466_v61, %v422_v0  ;;  %711 = vmatpush3.msra.mxu1 %v39_v6 }
  0x97   :  { %v107_v12 = vsel %vm97_vm1, %v106_v2, 0.0  ;;  %712 = vmatprep.subr.mxu1 %v776_v7 }
  0x98   :  { %108 = vadd.xlane.f32.xlu1 %v107_v12  ;;  %v474_v13 = vpop.permute.xlu1 %473  ;;  %713 = vmatpush3.msra.mxu1 %v38_v24 }
  0x99   :  { %v476_v14 = vadd.f32 %v474_v13, %v467_v4  ;;  %v477_v15 = vadd.f32 %v474_v13, %v468_v5  ;;  %v478_v16 = vadd.f32 %v474_v13, %v469_v8  ;;  %v479_v17 = vadd.f32 %v474_v13, %v470_v11  ;;  %714 = vmatprep.subr.mxu1 %v776_v7 }
  0x9a   :  { %715 = vmatpush3.msra.mxu1 %v37_v25 }
  0x9b   :  { %v480_v18 = vmax.f32 %v476_v14, 0.0  ;;  %v481_v19 = vmax.f32 %v477_v15, 0.0  ;;  %v482_v20 = vmax.f32 %v478_v16, 0.0  ;;  %v483_v21 = vmax.f32 %v479_v17, 0.0  ;;  %716 = vmatprep.subr.mxu1 %v776_v7 }
  0x9c   :  { %717 = vmatpush3.msra.mxu1 %v36_v26 }
  0x9d   :  { %v484_v22 = vadd.f32 %v481_v19, %v480_v18  ;;  %v487_v23 = vadd.f32 %v483_v21, %v482_v20  ;;  %721 = vmatprep.subr.mxu1 %v776_v7 }
  0x9f   :  { %485 = vadd.xlane.f32.xlu0 %v484_v22 }
  0xa3   :  { %488 = vadd.xlane.f32.xlu0 %v487_v23 }
  0xbd   :  { %v100_v27 = vpop.xlane.xlu0 %99 }
  0xbe   :  { %v197_v28 = vmax.f32 %v100_v27, 1.0 }
  0xc0   :  { %742 = vrcp.f32 %v197_v28 }
  0xcd   :  { %v743_v39 = vpop.eup %742 }
 0x121   :  { %v109_v10 = vpop.xlane.xlu1 %108 }
 0x122   :  { %v110_v30 = vsub.f32 %v100_v27, %v109_v10  ;;  %v195_v37 = vmul.f32 %v646_v32, %v109_v10 }
 0x124   :  { %v115_v34 = vmul.f32 %v645_v31, %v110_v30 }
 0x128   :  { %v486_v29 = vpop.xlane.xlu0 %485 }
 0x129   :  { %v491_v42 = vmul.f32 0.00390625, %v486_v29 }
 0x12b   :  { %v502_v46 = vrot.slane %v491_v42, %v501_v41 }
 0x12c   :  { %v489_v33 = vpop.xlane.xlu0 %488 }
 0x12d   :  { %v492_v9 = vmul.f32 0.00390625, %v489_v33 }
 0x12f   :  { %v506_v47 = vrot.slane %v492_v9, %v501_v41 }
 0x131   :  { %v507_v3 = vsel %vm118_vm4, %v506_v47, %v502_v46 }
 0x150   :  { %v187_v36 = vpop.f32.mrf.mxu0 }
 0x151   :  { %v188_v38 = vadd.f32 %v187_v36, %v115_v34 }
 0x152   :  { %v709_v40 = vpop.f32.mrf.mxu0 }
 0x153   :  { %v196_v43 = vadd.f32 %v195_v37, %v188_v38 }
 0x155   :  { %v199_v44 = vmul.f32 %v743_v39, %v196_v43 }
 0x157   :  { %719 = vmatmul.mubr.msk.f32.vlgmr.msra.gmra.mxu1 %vm204_vm5, %v199_v44 }
 0x158   :  { %722 = vmatpush3.msra.mxu1 %v43_v45  ;;  %723 = vmatprep.mubr.msk.f32.mxu1 %vm777_vm0, %v776_v7 }
 0x15b   :  { %724 = vmatmul.mubr.msk.f32.vlgmr.msra.gmra.mxu1 %vm508_vm6, %v507_v3 }
 0x217   :  { %v274_v48 = vpop.f32.mrf.mxu1 }
 0x218   :  { %v275_v49 = vadd.f32 %v647_v35, %v274_v48 }
 0x219   :  { %v720_v50 = vpop.f32.mrf.mxu1 }
 0x21a   :  { %v581_v52 = vsel %vm97_vm1, %v275_v49, -inf }
 0x21b   :  { %582 = vmax.xlane.f32.xlu1 %v581_v52  ;;  %v577_v53 = vpop.f32.mrf.mxu1 }
 0x21c   :  { %v578_v54 = vadd.f32 %v649_v51, %v577_v53 }
 0x21d   :  { %v725_v55 = vpop.f32.mrf.mxu1 }
 0x21e   :  { %v584_v56 = vsel %vm97_vm1, %v578_v54, -inf }
 0x21f   :  { %585 = vmax.xlane.f32.xlu0 %v584_v56 }
 0x2a4   :  { %v583_v57 = vpop.xlane.xlu1 %582 }
 0x2a5   :  { %v587_v58 = vsub.f32 %v275_v49, %v583_v57 }
 0x2a7   :  { %v588_v60 = vmul.f32 1.442695, %v587_v58 }
 0x2a8   :  { %v586_v61 = vpop.xlane.xlu0 %585 }
 0x2a9   :  { %744 = vpow2.f32 %v588_v60  ;;  %v596_v62 = vsub.f32 %v578_v54, %v586_v61 }
 0x2ab   :  { %v597_v63 = vmul.f32 1.442695, %v596_v62 }
 0x2ad   :  { %746 = vpow2.f32 %v597_v63 }
 0x2b6   :  { %v745_v59 = vpop.eup %744 }
 0x2b7   :  { %v590_v0 = vsel %vm97_vm1, %v745_v59, 0.0 }
 0x2b8   :  { %591 = vadd.xlane.f32.xlu1 %v590_v0 }
 0x2ba   :  { %v747_v1 = vpop.eup %746 }
 0x2bb   :  { %v599_v2 = vsel %vm97_vm1, %v747_v1, 0.0 }
 0x2bc   :  { %600 = vadd.xlane.f32.xlu0 %v599_v2 }
 0x2c9   :  { %614 = vrot.lane.b32.xlu1 %v275_v49, %s781_s3 }
 0x2d2   :  { %620 = vrot.lane.b32.xlu0 %v578_v54, %s782_s21 }
 0x341   :  { %v592_v4 = vpop.xlane.xlu1 %591 }
 0x342   :  { %748 = vlog2.f32 %v592_v4 }
 0x345   :  { %v601_v5 = vpop.xlane.xlu0 %600  ;;  %v615_v7 = vpop.permute.xlu1 %614 }
 0x346   :  { %750 = vlog2.f32 %v601_v5 }
 0x349   :  { %v621_v21 = vpop.permute.xlu0 %620 }
 0x34f   :  { %v749_v8 = vpop.eup %748 }
 0x350   :  { %v594_v11 = vmul.f32 0.6931472, %v749_v8 }
 0x352   :  { %v595_v12 = vadd.f32 %v594_v11, %v583_v57 }
 0x353   :  { %v751_v13 = vpop.eup %750 }
 0x354   :  { %v603_v14 = vmul.f32 0.6931472, %v751_v13  ;;  %v605_v15 = vmul.f32 0.1, %v595_v12 }
 0x356   :  { %v604_v16 = vadd.f32 %v603_v14, %v586_v61  ;;  %v607_v18 = vmul.f32 %v605_v15, %v275_v49 }
 0x358   :  { %v606_v17 = vmul.f32 0.1, %v604_v16 }
 0x35a   :  { %v608_v19 = vmul.f32 %v606_v17, %v578_v54 }
 0x35c   :  { %v609_v20 = vadd.f32 %v608_v19, %v607_v18 }
 0x35e   :  { %612 = vst.msk [vmem:[#allocation2] sm:$0x3] %vm97_vm1, %v609_v20 }
 0x35f   :  { %618 = vst.msk [vmem:[#allocation2] sm:$0x3] %vm617_vm8, %v615_v7 }
 0x360   :  { %624 = vst.msk [vmem:[#allocation2] sm:$0x3] %vm623_vm9, %v621_v21 }
 0x361   :  { %626 = vst.msk [vmem:[#allocation2] sm:$0x3] %vm625_vm10, %v605_v15 }
 0x362   :  { %628 = vst.msk [vmem:[#allocation2] sm:$0x3] %vm627_vm11, %v606_v17 }
 0x363   :  { %763 = shalt.err (!%p760_p4)
}
 0x364   :  { %638 = dma.vmem_to_hbm [thread:$0]  %s636_s0, 32, %s1011_s4, [#allocation3]  }
 0x365   :  { %772 = dma.done.wait [#allocation3], 32  }
 0x366   :  { %773 = vsyncadd [#allocation3], 4294967264 }
 0x367   :  { %642 = vsyncpa [#allocation3], 1 }

</bundles_post_ra>
